<compile_context>
chip_gen: v7x
topology: tpu7x:2x2x1
jax: 0.10.0
libtpu: 0.0.40
codegen_flags: <defaults>
</compile_context>

<pallas_src>
import jax
import jax.numpy as jnp
from jax.experimental import pallas as pl
from jax.experimental.pallas import tpu as pltpu

IN_DIM = 9 * 29      # 261
H1 = 128             # encoder hidden
LATENT = 192         # encoder output / decoder input (folded away inside the kernel)
H2 = 128             # decoder hidden
OUT_DIM = 9 * 29     # 261

# Rows per grid step.  512 is a multiple of 8, reaches ~85% of the HBM roofline, and keeps
# total VMEM (double-buffered f32 in/out tiles + resident bf16 weights + f32 intermediates)
# around ~6 MiB -- comfortably under even v5e's 16 MiB default scoped VMEM.
MAX_TILE_M = 512


def _round_up(n, m):
    return ((n + m - 1) // m) * m


def autoencoder_kernel(x_ref,
                       w1_ref, b1_ref,     # (261, 128) bf16, (1, 128) f32
                       w23_ref, b23_ref,   # (128, 128) bf16, (1, 128) f32 (enc-L2 @ dec-L1 folded)
                       w4_ref, b4_ref,     # (128, 261) bf16, (1, 261) f32
                       o_ref):
    # bf16 matmul inputs (MXU), f32 accumulation + epilogue (VPU/EUP).
    x = x_ref[...].astype(jnp.bfloat16)

    # Encoder layer 1 + ReLU(inplace=True)
    h1 = jnp.dot(x, w1_ref[...], preferred_element_type=jnp.float32) + b1_ref[...]
    h1 = jnp.maximum(h1, 0.0)

    # Encoder layer 2 -> decoder layer 1: no nonlinearity between them, so the pre-folded
    # 128x128 weight is mathematically identical (z = h1@W2+b2; h2 = ReLU(z@W3+b3)).
    h2 = jnp.dot(h1.astype(jnp.bfloat16), w23_ref[...],
                 preferred_element_type=jnp.float32) + b23_ref[...]
    h2 = jnp.maximum(h2, 0.0)

    # Decoder layer 2 + exact sigmoid (exp on EUP; the divide is free in the mem-bound regime).
    y = jnp.dot(h2.astype(jnp.bfloat16), w4_ref[...],
                preferred_element_type=jnp.float32) + b4_ref[...]
    o_ref[...] = (1.0 / (1.0 + jnp.exp(-y))).astype(o_ref.dtype)


def prepare_params(params):
    """One-time weight prep (do NOT call per forward): fold enc-L2 @ dec-L1 in f32, cast to bf16."""
    (w1, b1), (w2, b2), (w3, b3), (w4, b4) = params
    w23 = w2 @ w3                 # (128, 192) @ (192, 128) -> (128, 128)
    b23 = b2 @ w3 + b3            # (1, 128)
    return (w1.astype(jnp.bfloat16), b1.astype(jnp.float32),
            w23.astype(jnp.bfloat16), b23.astype(jnp.float32),
            w4.astype(jnp.bfloat16), b4.astype(jnp.float32))


@jax.jit
def autoencoder_forward(x, prepared):
    w1p, b1p, w23p, b23p, w4p, b4p = prepared
    B = x.shape[0]

    # Rows per grid step: multiple of 8 (f32 sublane); split the batch into >= 2 tiles when
    # possible so v7x's two TensorCores both get work; cap at MAX_TILE_M.
    tm = min(MAX_TILE_M, max(8, _round_up((B + 1) // 2, 8)))
    grid = (pl.cdiv(B, tm),)

    def const_spec(shape):
        # Constant index_map -> weights/biases stay resident in VMEM across all grid steps.
        return pl.BlockSpec(shape, lambda i: (0, 0))

    mm_elems = IN_DIM * H1 + H1 * H2 + H2 * OUT_DIM
    cost = pl.CostEstimate(
        flops=2 * B * mm_elems,
        transcendentals=B * OUT_DIM,
        bytes_accessed=(B * IN_DIM * 4          # x (f32)
                        + B * OUT_DIM * 4       # out (f32)
                        + 2 * mm_elems          # bf16 weights
                        + 4 * (H1 + H2 + OUT_DIM)),  # f32 biases
    )

    return pl.pallas_call(
        autoencoder_kernel,
        out_shape=jax.ShapeDtypeStruct((B, OUT_DIM), jnp.float32),
        grid=grid,
        in_specs=[
            pl.BlockSpec((tm, IN_DIM), lambda i: (i, 0)),     # streamed activation tile
            const_spec((IN_DIM, H1)), const_spec((1, H1)),    # layer 1 (resident)
            const_spec((H1, H2)), const_spec((1, H2)),        # folded layer 2/3 (resident)
            const_spec((H2, OUT_DIM)), const_spec((1, OUT_DIM)),  # layer 4 (resident)
        ],
        out_specs=pl.BlockSpec((tm, OUT_DIM), lambda i: (i, 0)),
        compiler_params=pltpu.CompilerParams(
            dimension_semantics=("parallel",)),               # v7x: shard batch over 2 TCs
        cost_estimate=cost,
    )(x, w1p, b1p, w23p, b23p, w4p, b4p)


def init_params(key):
    """PyTorch-style init: U(-1/sqrt(fan_in), 1/sqrt(fan_in)).
    Weights stored as (in_features, out_features); biases as (1, out_features)."""
    def linear(key, fan_in, fan_out):
        kw, kb = jax.random.split(key)
        bound = 1.0 / jnp.sqrt(fan_in)
        w = jax.random.uniform(kw, (fan_in, fan_out), jnp.float32, -bound, bound)
        b = jax.random.uniform(kb, (1, fan_out), jnp.float32, -bound, bound)
        return w, b

    k1, k2, k3, k4 = jax.random.split(key, 4)
    return (
        linear(k1, IN_DIM, H1),     # encoder layer 1
        linear(k2, H1, LATENT),     # encoder layer 2
        linear(k3, LATENT, H2),     # decoder layer 1
        linear(k4, H2, OUT_DIM),    # decoder layer 2
    )


def reference_forward(x, params):
    (w1, b1), (w2, b2), (w3, b3), (w4, b4) = params
    h = jnp.maximum(x @ w1 + b1, 0.0)
    z = h @ w2 + b2
    h2 = jnp.maximum(z @ w3 + b3, 0.0)
    return jax.nn.sigmoid(h2 @ w4 + b4)


if __name__ == "__main__":
    key = jax.random.PRNGKey(0)
    k_params, k_x = jax.random.split(key)

    params = init_params(k_params)
    prepared = prepare_params(params)          # one-time weight prep (folding + bf16 cast)

    # batch=8: single full tile.  batch=20: two grid steps with a partial (masked) edge block.
    for batch in (8, 20):
        x = jax.random.normal(jax.random.fold_in(k_x, batch), (batch, IN_DIM), jnp.float32)
        out = jax.block_until_ready(autoencoder_forward(x, prepared))
        ref = reference_forward(x, params)
        assert out.shape == (batch, OUT_DIM)
        err = float(jnp.max(jnp.abs(out - ref)))
        # Tolerance covers bf16 matmul inputs / folded-weight rounding (sigmoid outputs in [0, 1]).
        assert err < 2e-2, err

    print("KERNEL_OK")
</pallas_src>

<mosaic_0001>
module attributes {stable_mosaic.version = 11 : i64} {
  func.func @autoencoder_kernel(%arg0: i32, %arg1: memref<8x261xf32, #tpu.memory_space<vmem>>, %arg2: memref<261x128xbf16, #tpu.memory_space<vmem>>, %arg3: memref<1x128xf32, #tpu.memory_space<vmem>>, %arg4: memref<128x128xbf16, #tpu.memory_space<vmem>>, %arg5: memref<1x128xf32, #tpu.memory_space<vmem>>, %arg6: memref<128x261xbf16, #tpu.memory_space<vmem>>, %arg7: memref<1x261xf32, #tpu.memory_space<vmem>>, %arg8: memref<8x261xf32, #tpu.memory_space<vmem>>) attributes {dimension_semantics = [#tpu.dimension_semantics<parallel>], iteration_bounds = array<i64: 1>, scalar_prefetch = 0 : i64, scratch_operands = 0 : i64, tpu.core_type = #tpu.core_type<tc>, window_params = [{transform_indices = @transform_0, window_bounds = array<i64: 8, 261>}, {pipeline_mode = #tpu.pipeline_mode<synchronous>, transform_indices = @transform_1, window_bounds = array<i64: 261, 128>}, {pipeline_mode = #tpu.pipeline_mode<synchronous>, transform_indices = @transform_2, window_bounds = array<i64: 1, 128>}, {pipeline_mode = #tpu.pipeline_mode<synchronous>, transform_indices = @transform_3, window_bounds = array<i64: 128, 128>}, {pipeline_mode = #tpu.pipeline_mode<synchronous>, transform_indices = @transform_4, window_bounds = array<i64: 1, 128>}, {pipeline_mode = #tpu.pipeline_mode<synchronous>, transform_indices = @transform_5, window_bounds = array<i64: 128, 261>}, {pipeline_mode = #tpu.pipeline_mode<synchronous>, transform_indices = @transform_6, window_bounds = array<i64: 1, 261>}, {transform_indices = @transform_7, window_bounds = array<i64: 8, 261>}]} {
    %c0 = arith.constant 0 : index
    %c0_0 = arith.constant 0 : index
    %0 = vector.load %arg1[%c0, %c0_0] : memref<8x261xf32, #tpu.memory_space<vmem>>, vector<8x261xf32>
    %1 = arith.truncf %0 : vector<8x261xf32> to vector<8x261xbf16>
    %c0_1 = arith.constant 0 : index
    %c0_2 = arith.constant 0 : index
    %2 = vector.load %arg2[%c0_1, %c0_2] : memref<261x128xbf16, #tpu.memory_space<vmem>>, vector<261x128xbf16>
    %cst = arith.constant dense<0.000000e+00> : vector<8x128xf32>
    %3 = tpu.matmul %1, %2, %cst {dimension_numbers = #tpu.dot_dimension_numbers<[1], [0], [0], [1], [0, 0, 1, 1], [], []>} : vector<8x261xbf16>, vector<261x128xbf16>, vector<8x128xf32> -> vector<8x128xf32>
    %c0_3 = arith.constant 0 : index
    %c0_4 = arith.constant 0 : index
    %4 = vector.load %arg3[%c0_3, %c0_4] : memref<1x128xf32, #tpu.memory_space<vmem>>, vector<1x128xf32>
    %5 = vector.broadcast %4 : vector<1x128xf32> to vector<8x128xf32>
    %6 = arith.addf %3, %5 : vector<8x128xf32>
    %cst_5 = arith.constant 0.000000e+00 : f32
    %7 = vector.broadcast %cst_5 : f32 to vector<8x128xf32>
    %8 = arith.maximumf %6, %7 : vector<8x128xf32>
    %9 = arith.truncf %8 : vector<8x128xf32> to vector<8x128xbf16>
    %c0_6 = arith.constant 0 : index
    %c0_7 = arith.constant 0 : index
    %10 = vector.load %arg4[%c0_6, %c0_7] : memref<128x128xbf16, #tpu.memory_space<vmem>>, vector<128x128xbf16>
    %cst_8 = arith.constant dense<0.000000e+00> : vector<8x128xf32>
    %11 = tpu.matmul %9, %10, %cst_8 {dimension_numbers = #tpu.dot_dimension_numbers<[1], [0], [0], [1], [0, 0, 1, 1], [], []>} : vector<8x128xbf16>, vector<128x128xbf16>, vector<8x128xf32> -> vector<8x128xf32>
    %c0_9 = arith.constant 0 : index
    %c0_10 = arith.constant 0 : index
    %12 = vector.load %arg5[%c0_9, %c0_10] : memref<1x128xf32, #tpu.memory_space<vmem>>, vector<1x128xf32>
    %13 = vector.broadcast %12 : vector<1x128xf32> to vector<8x128xf32>
    %14 = arith.addf %11, %13 : vector<8x128xf32>
    %cst_11 = arith.constant 0.000000e+00 : f32
    %15 = vector.broadcast %cst_11 : f32 to vector<8x128xf32>
    %16 = arith.maximumf %14, %15 : vector<8x128xf32>
    %17 = arith.truncf %16 : vector<8x128xf32> to vector<8x128xbf16>
    %c0_12 = arith.constant 0 : index
    %c0_13 = arith.constant 0 : index
    %18 = vector.load %arg6[%c0_12, %c0_13] : memref<128x261xbf16, #tpu.memory_space<vmem>>, vector<128x261xbf16>
    %cst_14 = arith.constant dense<0.000000e+00> : vector<8x261xf32>
    %19 = tpu.matmul %17, %18, %cst_14 {dimension_numbers = #tpu.dot_dimension_numbers<[1], [0], [0], [1], [0, 0, 1, 1], [], []>} : vector<8x128xbf16>, vector<128x261xbf16>, vector<8x261xf32> -> vector<8x261xf32>
    %c0_15 = arith.constant 0 : index
    %c0_16 = arith.constant 0 : index
    %20 = vector.load %arg7[%c0_15, %c0_16] : memref<1x261xf32, #tpu.memory_space<vmem>>, vector<1x261xf32>
    %21 = vector.broadcast %20 : vector<1x261xf32> to vector<8x261xf32>
    %22 = arith.addf %19, %21 : vector<8x261xf32>
    %cst_17 = arith.constant 0.000000e+00 : f32
    %23 = vector.broadcast %cst_17 : f32 to vector<8x261xf32>
    %24 = arith.subf %23, %22 : vector<8x261xf32>
    %25 = math.exp %24 : vector<8x261xf32>
    %cst_18 = arith.constant 1.000000e+00 : f32
    %26 = vector.broadcast %cst_18 : f32 to vector<8x261xf32>
    %27 = arith.addf %26, %25 : vector<8x261xf32>
    %cst_19 = arith.constant 1.000000e+00 : f32
    %28 = vector.broadcast %cst_19 : f32 to vector<8x261xf32>
    %29 = arith.divf %28, %27 : vector<8x261xf32>
    %c0_20 = arith.constant 0 : index
    %c0_21 = arith.constant 0 : index
    %30 = vector.load %arg8[%c0_20, %c0_21] : memref<8x261xf32, #tpu.memory_space<vmem>>, vector<8x261xf32>
    tpu.vector_store %arg8[%c0_20, %c0_21], %29 {strides = array<i32>} : memref<8x261xf32, #tpu.memory_space<vmem>>, vector<8x261xf32>,
    return
  }
  func.func @transform_0(%arg0: i32) -> (i32, i32) {
    %c0_i32 = arith.constant 0 : i32
    %c0_i32_0 = arith.constant 0 : i32
    return %arg0, %c0_i32 : i32, i32
  }
  func.func @transform_1(%arg0: i32) -> (i32, i32) {
    %c0_i32 = arith.constant 0 : i32
    %c0_i32_0 = arith.constant 0 : i32
    %c0_i32_1 = arith.constant 0 : i32
    return %c0_i32, %c0_i32_0 : i32, i32
  }
  func.func @transform_2(%arg0: i32) -> (i32, i32) {
    %c0_i32 = arith.constant 0 : i32
    %c0_i32_0 = arith.constant 0 : i32
    %c0_i32_1 = arith.constant 0 : i32
    return %c0_i32, %c0_i32_0 : i32, i32
  }
  func.func @transform_3(%arg0: i32) -> (i32, i32) {
    %c0_i32 = arith.constant 0 : i32
    %c0_i32_0 = arith.constant 0 : i32
    %c0_i32_1 = arith.constant 0 : i32
    return %c0_i32, %c0_i32_0 : i32, i32
  }
  func.func @transform_4(%arg0: i32) -> (i32, i32) {
    %c0_i32 = arith.constant 0 : i32
    %c0_i32_0 = arith.constant 0 : i32
    %c0_i32_1 = arith.constant 0 : i32
    return %c0_i32, %c0_i32_0 : i32, i32
  }
  func.func @transform_5(%arg0: i32) -> (i32, i32) {
    %c0_i32 = arith.constant 0 : i32
    %c0_i32_0 = arith.constant 0 : i32
    %c0_i32_1 = arith.constant 0 : i32
    return %c0_i32, %c0_i32_0 : i32, i32
  }
  func.func @transform_6(%arg0: i32) -> (i32, i32) {
    %c0_i32 = arith.constant 0 : i32
    %c0_i32_0 = arith.constant 0 : i32
    %c0_i32_1 = arith.constant 0 : i32
    return %c0_i32, %c0_i32_0 : i32, i32
  }
  func.func @transform_7(%arg0: i32) -> (i32, i32) {
    %c0_i32 = arith.constant 0 : i32
    %c0_i32_0 = arith.constant 0 : i32
    return %arg0, %c0_i32 : i32, i32
  }
}

</mosaic_0001>

<bundles_post_ra>
// kernel: autoencoder_forward.1
= control target key start
LH: loop header
LB: loop body
LE: loop exit
PB: predicated region body
PF: predicated region fallthrough
CT: control target
= control target key end

     0   :  { %v910_v2 = vmov 0.0   ;;  %vm911_vm0 = vmmov 0   ;;  %vm177_vm1 = vcmask 1041408   ;;  %vm178_vm2 = vcmask 1042432   ;;  %s1157_s0 = inlined_call_operand.vmem [shape: f32[8,261], index: 0, kind: input, shape index: {}]   ;;  %s1158_s1 = inlined_call_operand.vmem [shape: bf16[261,128], index: 1, kind: input, shape index: {}]   ;;  %s1159_s2 = inlined_call_operand.vmem [shape: f32[1,128], index: 2, kind: input, shape index: {}]   ;;  %s1160_s3 = inlined_call_operand.vmem [shape: bf16[128,128], index: 3, kind: input, shape index: {}]   ;;  %s1161_s4 = inlined_call_operand.vmem [shape: f32[1,128], index: 4, kind: input, shape index: {}]   ;;  %s1162_s5 = inlined_call_operand.vmem [shape: bf16[128,261], index: 5, kind: input, shape index: {}]   ;;  %s1163_s6 = inlined_call_operand.vmem [shape: f32[1,261], index: 6, kind: input, shape index: {}]   ;;  %s1164_s7 = inlined_call_operand.hbm [shape: f32[8,261], index: 7, kind: output, shape index: {}]  }
   0x1   :  { %v817_v0 = vld [vmem:[%s1158_s1 + $0x40] sm:$0xff]   ;;  %766 = vmatprep.subr.bf16.mxu1 %v910_v2  ;;  %v819_v3 = vld [vmem:[%s1158_s1 + $0x48] sm:$0xff]   ;;  %v821_v5 = vld [vmem:[%s1158_s1 + $0x50] sm:$0xff]   ;;  %768 = vmatprep.mubr.msk.bf16.mxu1 %vm911_vm0, %v910_v2  ;;  %v912_v10 = vmov 65535   ;;  %vm173_vm3 = vcmask 39936  }
   0x2   :  { %v818_v1 = vld [vmem:[%s1158_s1] sm:$0xff]   ;;  %724 = vmatprep.subr.bf16.mxu0 %v817_v0  ;;  %v820_v4 = vld [vmem:[%s1158_s1 + $0x8] sm:$0xff]   ;;  %v822_v6 = vld [vmem:[%s1158_s1 + $0x10] sm:$0xff]   ;;  %v179_v11 = vsel %vm177_vm1, 4294967295, %v912_v10 }
   0x3   :  { %725 = vmatpush3.bf16.msra.mxu0 %v818_v1  ;;  %v823_v7 = vld [vmem:[%s1158_s1 + $0x58] sm:$0xff]   ;;  %v825_v9 = vld [vmem:[%s1158_s1 + $0x60] sm:$0xff]   ;;  %v827_v13 = vld [vmem:[%s1158_s1 + $0x68] sm:$0xff]   ;;  %v180_v14 = vsel %vm178_vm2, %v179_v11, 0 }
   0x4   :  { %726 = vmatprep.subr.bf16.mxu0 %v819_v3  ;;  %v824_v8 = vld [vmem:[%s1158_s1 + $0x18] sm:$0xff]   ;;  %v826_v12 = vld [vmem:[%s1158_s1 + $0x20] sm:$0xff]   ;;  %v29_v15 = vld [vmem:[%s1157_s0 + $0x8] sm:$0xff] }
   0x5   :  { %v833_v16 = vld [vmem:[%s1158_s1 + $0x80] ss:$0 sps:$4 sm:$0x77]   ;;  %v32_v17 = vpack.c.bf16 %v29_v15, %v29_v15  ;;  %v30_v18 = vld [vmem:[%s1157_s0 + $0x10] sm:$0xff]  ;;  %v828_v19 = vld [vmem:[%s1158_s1 + $0x28] sm:$0xff]  }
   0x6   :  { %v182_v20 = vand.u32 %v833_v16, %v180_v14  ;;  %v829_v21 = vld [vmem:[%s1158_s1 + $0x70] sm:$0xff]   ;;  %v33_v22 = vpack.c.bf16 %v30_v18, %v30_v18  ;;  %v834_v23 = vld [vmem:[%s1160_s3] sm:$0xff]   ;;  %v831_v25 = vld [vmem:[%s1158_s1 + $0x78] sm:$0xff]  }
   0x7   :  { %727 = vmatpush3.bf16.msra.mxu0 %v820_v4  ;;  %216 = vmatprep.mubr.bf16.mxu0 %v32_v17  ;;  %v830_v24 = vld [vmem:[%s1158_s1 + $0x30] sm:$0xff]   ;;  %v835_v26 = vld [vmem:[%s1160_s3 + $0x8] sm:$0xff]   ;;  %v832_v27 = vld [vmem:[%s1158_s1 + $0x38] sm:$0xff]  }
   0x8   :  { %728 = vmatprep.subr.bf16.mxu0 %v821_v5  ;;  %767 = vmatpush3.bf16.msra.mxu1 %v182_v20  ;;  %v28_v28 = vld [vmem:[%s1157_s0] sm:$0xff]  ;;  %v836_v29 = vld [vmem:[%s1160_s3 + $0x10] sm:$0xff]   ;;  %v837_v31 = vld [vmem:[%s1160_s3 + $0x18] sm:$0xff]  }
   0x9   :  { %772 = vmatprep.subr.bf16.mxu1 %v910_v2  ;;  %v31_v30 = vpack.c.bf16 %v28_v28, %v28_v28 }
   0xb   :  { %729 = vmatpush3.bf16.msra.mxu0 %v822_v6  ;;  %769 = vmatmul.mubr.msk.bf16.vlgmr.msra.gmra.mrb[0].mxu1 %vm173_vm3, %v33_v22 }
   0xc   :  { %730 = vmatprep.subr.bf16.mxu0 %v823_v7  ;;  %773 = vmatpush3.bf16.msra.mxu1 %v834_v23 }
   0xd   :  { %774 = vmatprep.subr.bf16.mxu1 %v910_v2  ;;  %788 = vmatprep.mubr.msk.bf16.mxu1 %vm911_vm0, %v910_v2 }
   0xf   :  { %731 = vmatpush3.bf16.msra.mxu0 %v824_v8 }
  0x10   :  { %732 = vmatprep.subr.bf16.mxu0 %v825_v9  ;;  %775 = vmatpush3.bf16.msra.mxu1 %v835_v26 }
  0x11   :  { %776 = vmatprep.subr.bf16.mxu1 %v910_v2 }
  0x13   :  { %733 = vmatpush3.bf16.msra.mxu0 %v826_v12 }
  0x14   :  { %734 = vmatprep.subr.bf16.mxu0 %v827_v13  ;;  %777 = vmatpush3.bf16.msra.mxu1 %v836_v29 }
  0x15   :  { %778 = vmatprep.subr.bf16.mxu1 %v910_v2 }
  0x17   :  { %735 = vmatpush3.bf16.msra.mxu0 %v828_v19 }
  0x18   :  { %736 = vmatprep.subr.bf16.mxu0 %v829_v21 }
  0x1b   :  { %737 = vmatpush3.bf16.msra.mxu0 %v830_v24 }
  0x1c   :  { %738 = vmatprep.subr.bf16.mxu0 %v831_v25 }
  0x1f   :  { %739 = vmatpush3.bf16.msra.mxu0 %v832_v27 }
  0x22   :  { %217 = vmatmul.mubr.bf16.vlgmr.msra.gmra.mrb[0].mxu0 %v31_v30 }
  0x23   :  { %12 = vsyncpa [#allocation3], 0  ;;  %779 = vmatpush3.bf16.msra.mxu1 %v837_v31  ;;  %v838_v32 = vld [vmem:[%s1160_s3 + $0x20] sm:$0xff]   ;;  %v839_v33 = vld [vmem:[%s1160_s3 + $0x28] sm:$0xff]   ;;  %v913_v11 = vmov 0   ;;  %v413_v19 = vlaneseq }
  0x24   :  { %780 = vmatprep.subr.bf16.mxu1 %v910_v2  ;;  %v840_v34 = vld [vmem:[%s1160_s3 + $0x30] sm:$0xff]   ;;  %v841_v35 = vld [vmem:[%s1160_s3 + $0x38] sm:$0xff]   ;;  %v842_v36 = vld [vmem:[%s1162_s5] ss:$12 sps:$4 sm:$0xff]   ;;  %588 = vmatprep.mubr.bf16.mxu0 %v913_v11 }
  0x25   :  { %v844_v37 = vld [vmem:[%s1162_s5 + $0x4] ss:$12 sps:$4 sm:$0xff]   ;;  %v848_v38 = vld [vmem:[%s1162_s5 + $0x1c] ss:$12 sps:$4 sm:$0xff]   ;;  %v852_v40 = vld [vmem:[%s1162_s5 + $0x34] ss:$12 sps:$4 sm:$0xff]  }
  0x26   :  { %556 = vmatprep.subr.bf16.mxu0 %v844_v37  ;;  %v846_v39 = vld [vmem:[%s1162_s5 + $0x18] ss:$12 sps:$4 sm:$0xff]   ;;  %v850_v41 = vld [vmem:[%s1162_s5 + $0x30] ss:$12 sps:$4 sm:$0xff]   ;;  %v854_v43 = vld [vmem:[%s1162_s5 + $0x48] ss:$12 sps:$4 sm:$0xff]  }
  0x27   :  { %781 = vmatpush3.bf16.msra.mxu1 %v838_v32  ;;  %557 = vmatpush1.bf16.msra.mxu0 %v842_v36  ;;  %v856_v42 = vld [vmem:[%s1162_s5 + $0x4c] ss:$12 sps:$4 sm:$0xff]   ;;  %v860_v44 = vld [vmem:[%s1162_s5 + $0x64] ss:$12 sps:$4 sm:$0xff]   ;;  %v864_v46 = vld [vmem:[%s1162_s5 + $0x7c] ss:$12 sps:$4 sm:$0xff]  }
  0x28   :  { %782 = vmatprep.subr.bf16.mxu1 %v910_v2  ;;  %558 = vmatprep.subr.bf16.mxu0 %v848_v38  ;;  %v858_v45 = vld [vmem:[%s1162_s5 + $0x60] ss:$12 sps:$4 sm:$0xff]   ;;  %v862_v47 = vld [vmem:[%s1162_s5 + $0x78] ss:$12 sps:$4 sm:$0xff]   ;;  %v866_v49 = vld [vmem:[%s1162_s5 + $0x90] ss:$12 sps:$4 sm:$0xff]  }
  0x29   :  { %v868_v48 = vld [vmem:[%s1162_s5 + $0x94] ss:$12 sps:$4 sm:$0xff]   ;;  %v853_v3 = vld [vmem:[%s1162_s5 + $0x38] ss:$12 sps:$4 sm:$0xff]   ;;  %v857_v4 = vld [vmem:[%s1162_s5 + $0x50] ss:$12 sps:$4 sm:$0xff]  }
  0x2a   :  { %v672_v56 = vld [vmem:[%s1159_s2] ss:$0 sm:$0xff]  ;;  %v845_v63 = vld [vmem:[%s1162_s5 + $0x8] ss:$12 sps:$4 sm:$0xff]   ;;  %v869_v7 = vld [vmem:[%s1162_s5 + $0x98] ss:$12 sps:$4 sm:$0xff]  }
  0x2b   :  { %783 = vmatpush3.bf16.msra.mxu1 %v839_v33  ;;  %559 = vmatpush1.bf16.msra.mxu0 %v846_v39  ;;  %v849_v1 = vld [vmem:[%s1162_s5 + $0x20] ss:$12 sps:$4 sm:$0xff]   ;;  %v861_v5 = vld [vmem:[%s1162_s5 + $0x68] ss:$12 sps:$4 sm:$0xff]   ;;  %v873_v10 = vld [vmem:[%s1162_s5 + $0xb0] ss:$12 sps:$4 sm:$0xff]  }
  0x2c   :  { %784 = vmatprep.subr.bf16.mxu1 %v910_v2  ;;  %560 = vmatprep.subr.bf16.mxu0 %v852_v40  ;;  %v865_v6 = vld [vmem:[%s1162_s5 + $0x80] ss:$12 sps:$4 sm:$0xff]   ;;  %v870_v9 = vld [vmem:[%s1162_s5 + $0xa8] ss:$12 sps:$4 sm:$0xff]   ;;  %v414_v20 = vshrl.u32 %v413_v19, 7 }
  0x2d   :  { %v872_v8 = vld [vmem:[%s1162_s5 + $0xac] ss:$12 sps:$4 sm:$0xff]   ;;  %v691_v12 = vld [vmem:[%s1161_s4] ss:$0 sm:$0xff]  ;;  %s914_s4 = smov [#allocation2]  }
  0x2e   :  { %v415_v21 = vsub.s32 0, %v414_v20  ;;  %v423_v22 = vsub.s32 2, %v414_v20  ;;  %v411_v23 = vld [vmem:[%s1163_s6] sm:$0x7]  ;;  %v419_v24 = vsub.s32 1, %v414_v20  ;;  %s664_s6 = sshll.u32 %s914_s4, 4  ;;  %s665_s6 = int_to_ptr.vmem [resolvable:$true] %s664_s6 }
  0x2f   :  { %785 = vmatpush3.bf16.msra.mxu1 %v840_v34  ;;  %561 = vmatpush1.bf16.msra.mxu0 %v850_v41  ;;  %s886_s9 = scalar_lea.vmem %s665_s6, 384  ;;  %p891_p1 = scmp.lt.s32.totalorder %s665_s6, %s665_s6 }
  0x30   :  { %786 = vmatprep.subr.bf16.mxu1 %v910_v2  ;;  %562 = vmatprep.subr.bf16.mxu0 %v856_v42  ;;  %v416_v25 = vrot.slane %v411_v23, %v415_v21  ;;  %v424_v26 = vrot.slane %v411_v23, %v423_v22  ;;  %v420_v27 = vrot.slane %v411_v23, %v419_v24  ;;  %p887_p0 = scmp.ne.s32.totalorder %s665_s6, %s886_s9  ;;  %p892_p2 = scmp.lt.s32.totalorder %s886_s9, %s886_s9 }
  0x32   :  { %p893_p3 = por %p892_p2, %p891_p1 }
  0x33   :  { %787 = vmatpush3.bf16.msra.mxu1 %v841_v35  ;;  %563 = vmatpush1.bf16.msra.mxu0 %v854_v43 }
  0x34   :  { %792 = vmatprep.subr.bf16.mxu1 %v910_v2  ;;  %564 = vmatprep.subr.bf16.mxu0 %v860_v44  ;;  %p894_p4 = pnand %p893_p3, %p887_p0 }
  0x37   :  { %565 = vmatpush1.bf16.msra.mxu0 %v858_v45 }
  0x38   :  { %566 = vmatprep.subr.bf16.mxu0 %v864_v46 }
  0x3b   :  { %567 = vmatpush1.bf16.msra.mxu0 %v862_v47 }
  0x3c   :  { %568 = vmatprep.subr.bf16.mxu0 %v868_v48 }
  0x3f   :  { %569 = vmatpush1.bf16.msra.mxu0 %v866_v49 }
  0x40   :  { %570 = vmatprep.subr.bf16.mxu0 %v872_v8 }
  0x43   :  { %571 = vmatpush1.bf16.msra.mxu0 %v870_v9 }
  0xde   :  { %v258_v50 = vpop.f32.mrb[0].mxu1 }
  0xdf   :  { %v770_v51 = vpop.f32.mrb[1].mxu1 }
  0xe0   :  { %v261_v52 = vpop.f32.mrb[2].mxu1 }
  0xe1   :  { %v771_v53 = vpop.f32.mrb[3].mxu1 }
  0xf5   :  { %v740_v54 = vpop.f32.mrb[0].mxu0 }
  0xf6   :  { %v741_v55 = vpop.f32.mrb[1].mxu0 }
  0xf7   :  { %v742_v57 = vadd.f32 %v741_v55, %v740_v54  ;;  %v743_v58 = vpop.f32.mrb[2].mxu0 }
  0xf8   :  { %v744_v59 = vpop.f32.mrb[3].mxu0 }
  0xf9   :  { %v219_v60 = vadd.f32 %v742_v57, %v672_v56 }
  0xfb   :  { %v259_v61 = vadd.f32 %v258_v50, %v219_v60 }
  0xfd   :  { %v264_v62 = vmax.f32 %v259_v61, 0.0 }
  0xff   :  { %v265_v0 = vpack.c.bf16 %v264_v62, %v264_v62 }
 0x101   :  { %789 = vmatmul.mubr.bf16.vlgmr.msra.gmra.mrb[4].mxu1 %v265_v0 }
 0x102   :  { %793 = vmatpush3.bf16.msra.mxu1 %v845_v63  ;;  %808 = vmatprep.mubr.msk.bf16.mxu1 %vm911_vm0, %v910_v2 }
 0x103   :  { %794 = vmatprep.subr.bf16.mxu1 %v910_v2 }
 0x106   :  { %795 = vmatpush3.bf16.msra.mxu1 %v849_v1 }
 0x107   :  { %796 = vmatprep.subr.bf16.mxu1 %v910_v2 }
 0x10a   :  { %797 = vmatpush3.bf16.msra.mxu1 %v853_v3 }
 0x10b   :  { %798 = vmatprep.subr.bf16.mxu1 %v910_v2 }
 0x10e   :  { %799 = vmatpush3.bf16.msra.mxu1 %v857_v4 }
 0x10f   :  { %800 = vmatprep.subr.bf16.mxu1 %v910_v2 }
 0x112   :  { %801 = vmatpush3.bf16.msra.mxu1 %v861_v5 }
 0x113   :  { %802 = vmatprep.subr.bf16.mxu1 %v910_v2 }
 0x116   :  { %803 = vmatpush3.bf16.msra.mxu1 %v865_v6 }
 0x117   :  { %804 = vmatprep.subr.bf16.mxu1 %v910_v2 }
 0x11a   :  { %805 = vmatpush3.bf16.msra.mxu1 %v869_v7 }
 0x11b   :  { %806 = vmatprep.subr.bf16.mxu1 %v910_v2 }
 0x11e   :  { %807 = vmatpush3.bf16.msra.mxu1 %v873_v10 }
 0x1d4   :  { %v371_v13 = vpop.f32.mrb[4].mxu1 }
 0x1d5   :  { %v372_v14 = vadd.f32 %v691_v12, %v371_v13  ;;  %v790_v2 = vpop.f32.mrb[5].mxu1 }
 0x1d6   :  { %v374_v15 = vpop.f32.mrb[6].mxu1 }
 0x1d7   :  { %v377_v16 = vmax.f32 %v372_v14, 0.0  ;;  %v791_v17 = vpop.f32.mrb[7].mxu1 }
 0x1d9   :  { %v378_v18 = vpack.c.bf16 %v377_v16, %v377_v16 }
 0x1db   :  { %589 = vmatmul.mubr.bf16.vlgmr.msra.gmra.mrb[4].mxu0 %v378_v18  ;;  %809 = vmatmul.mubr.bf16.vlgmr.msra.gmra.mrb[8].mxu1 %v378_v18 }
 0x2ae   :  { %v590_v28 = vpop.f32.mrb[4].mxu0  ;;  %v631_v29 = vpop.f32.mrb[8].mxu1 }
 0x2af   :  { %v591_v30 = vadd.f32 %v590_v28, %v416_v25  ;;  %v632_v31 = vadd.f32 %v631_v29, %v424_v26  ;;  %v592_v32 = vpop.f32.mrb[5].mxu0  ;;  %v810_v33 = vpop.f32.mrb[9].mxu1 }
 0x2b0   :  { %v593_v34 = vadd.f32 %v592_v32, %v420_v27  ;;  %v594_v35 = vpop.f32.mrb[6].mxu0  ;;  %v634_v36 = vpop.f32.mrb[10].mxu1 }
 0x2b1   :  { %v637_v37 = vsub.f32 0.0, %v591_v30  ;;  %v639_v38 = vsub.f32 0.0, %v632_v31  ;;  %v595_v39 = vpop.f32.mrb[7].mxu0  ;;  %v811_v40 = vpop.f32.mrb[11].mxu1 }
 0x2b2   :  { %v638_v41 = vsub.f32 0.0, %v593_v34 }
 0x2b3   :  { %v640_v42 = vmul.f32 1.442695, %v637_v37  ;;  %v644_v43 = vmul.f32 1.442695, %v639_v38 }
 0x2b4   :  { %v642_v44 = vmul.f32 1.442695, %v638_v41 }
 0x2b5   :  { %874 = vpow2.f32 %v640_v42 }
 0x2b6   :  { %876 = vpow2.f32 %v644_v43 }
 0x2b7   :  { %878 = vpow2.f32 %v642_v44 }
 0x2bf   :  { %v875_v45 = vpop.eup %874 }
 0x2c0   :  { %v877_v46 = vpop.eup %876  ;;  %v646_v47 = vadd.f32 1.0, %v875_v45 }
 0x2c1   :  { %v879_v48 = vpop.eup %878  ;;  %v648_v49 = vadd.f32 1.0, %v877_v46 }
 0x2c2   :  { %880 = vrcp.f32 %v646_v47  ;;  %v647_v50 = vadd.f32 1.0, %v879_v48 }
 0x2c3   :  { %882 = vrcp.f32 %v648_v49 }
 0x2c4   :  { %884 = vrcp.f32 %v647_v50 }
 0x2cc   :  { %v881_v51 = vpop.eup %880 }
 0x2cd   :  { %v883_v52 = vpop.eup %882  ;;  %655 = vst [vmem:[#allocation2] sm:$0xff] %v881_v51 }
 0x2ce   :  { %v885_v53 = vpop.eup %884  ;;  %657 = vst.msk [vmem:[#allocation2 + $0x10] sm:$0xff] %vm173_vm3, %v883_v52 }
 0x2cf   :  { %656 = vst [vmem:[#allocation2 + $0x8] sm:$0xff] %v885_v53 }
 0x2d0   :  { %897 = shalt.err (!%p894_p4)
}
 0x2d1   :  { %s898_s12 = scalar_lea.hbm %s1164_s7, 384 }
 0x2d2   :  { %p899_p5 = scmp.ne.s32.totalorder %s1164_s7, %s898_s12  ;;  %p902_p6 = scmp.lt.u32.totalorder %s898_s12, %s1164_s7 }
 0x2d4   :  { %p904_p7 = pnand %p902_p6, %p899_p5 }
 0x2d6   :  { %907 = shalt.err (!%p904_p7)
}
 0x2d7   :  { %667 = dma.vmem_to_hbm [thread:$0]  %s665_s6, 384, %s1164_s7, [#allocation3]  }
 0x2d8   :  { %908 = dma.done.wait [#allocation3], 384  }
 0x2d9   :  { %909 = vsyncadd [#allocation3], 4294966912 }
 0x2da   :  { %671 = vsyncpa [#allocation3], 1 }

</bundles_post_ra>
